<compile_context>
chip_gen: v6e
topology: v6e:2x2x1
jax: 0.10.0
libtpu: 0.0.40
codegen_flags: <defaults>
</compile_context>

<pallas_src>
import functools

import jax
import jax.numpy as jnp
from jax import lax
from jax.experimental import pallas as pl
from jax.experimental.pallas import tpu as pltpu

EPS = 1e-5  # nn.LayerNorm default


def _iln_kernel(x_ref, m_ref, g_ref, b_ref, o_ref):
    # x_ref: (tm, D) HBM dtype   m_ref: (tm, 1) int32
    # g_ref/b_ref: (1, D) f32    o_ref: (tm, D) HBM dtype
    x = x_ref[...].astype(jnp.float32)
    mean = jnp.mean(x, axis=-1, keepdims=True)
    xc = x - mean
    var = jnp.mean(xc * xc, axis=-1, keepdims=True)
    inv = lax.rsqrt(var + EPS)
    y = xc * inv * g_ref[...] + b_ref[...]
    m = m_ref[...] != 0  # (tm, 1) -> broadcast over D
    # Passthrough branch in the HBM dtype: the f32 upcast of the tile does not
    # have to stay live to the store (halves live f32 state for bf16 inputs).
    o_ref[...] = jnp.where(m, y.astype(o_ref.dtype), x_ref[...])


def _round_up(x, m):
    return ((x + m - 1) // m) * m


_MIN_GRID_STEPS = 8                      # >= 2x TensorCores (v7x) and 4-8 pipeline steps
_TM_CAP = 2048                           # ~85% of HBM roofline reached well below this
_TARGET_BLOCK_BYTES = 2 * 1024 * 1024    # per in / per out block, HBM dtype


def _choose_tm(R, D, itemsize):
    """Largest sublane-packed row tile with ~2 MiB blocks and a >= 8-step grid."""
    pack = max(8, 32 // itemsize)        # 8 for f32, 16 for bf16, 32 for int8/fp8
    tm_budget = max(pack, _TARGET_BLOCK_BYTES // max(D * itemsize, 1))
    # Keep grid = cdiv(R, tm) at least _MIN_GRID_STEPS (when R allows) so the
    # pipeline overlaps and both v7x TensorCores get work.
    tm_grid = _round_up(pl.cdiv(R, _MIN_GRID_STEPS), pack)
    tm = min(tm_budget, tm_grid, _TM_CAP)
    tm = max(pack, (tm // pack) * pack)
    return int(tm)


def _vmem_limit_bytes(tm, D, itemsize):
    """Explicit scoped-VMEM limit from the actual block + f32-temp footprint."""
    block = tm * D * itemsize
    footprint = (
        2 * block            # input x, double-buffered
        + 2 * block          # output, double-buffered
        + 2 * tm * 4         # int32 mask column, double-buffered
        + 4 * 2 * D * 4      # gamma/beta f32 (constant index, counted generously)
        + 3 * tm * D * 4     # in-kernel f32 temporaries (x, xc, y)
    )
    # 1.5x margin for Mosaic internal scratch; clamp to [16 MiB, 32 MiB] so the
    # same setting is valid on v5e/v6e/v7x physical VMEM.
    return int(min(32 << 20, max(16 << 20, footprint * 3 // 2)))


def _masked_layernorm_2d(x2d, mask1d, gamma, beta):
    """x2d: (R, D), mask1d: (R,) bool, gamma/beta: (D,). Returns (R, D)."""
    R, D = x2d.shape
    itemsize = x2d.dtype.itemsize
    tm = _choose_tm(R, D, itemsize)

    m_col = mask1d.astype(jnp.int32).reshape(R, 1)
    g2 = gamma.reshape(1, D).astype(jnp.float32)
    b2 = beta.reshape(1, D).astype(jnp.float32)

    return pl.pallas_call(
        _iln_kernel,
        out_shape=jax.ShapeDtypeStruct((R, D), x2d.dtype),
        grid_spec=pltpu.PrefetchScalarGridSpec(
            num_scalar_prefetch=0,
            grid=(pl.cdiv(R, tm),),
            in_specs=[
                pl.BlockSpec((tm, D), lambda i: (i, 0)),
                pl.BlockSpec((tm, 1), lambda i: (i, 0)),
                pl.BlockSpec((1, D), lambda i: (0, 0)),  # constant index -> DMA'd once
                pl.BlockSpec((1, D), lambda i: (0, 0)),
            ],
            out_specs=pl.BlockSpec((tm, D), lambda i: (i, 0)),
        ),
        compiler_params=pltpu.CompilerParams(
            dimension_semantics=("parallel",),
            vmem_limit_bytes=_vmem_limit_bytes(tm, D, itemsize),
        ),
    )(x2d, m_col, g2, b2)


def invariant_layer_norm(res_H, ligand_feat, atom_mask, ligand_mask, params):
    """Pallas implementation of InvariantLayerNorm.forward.

    res_H:       (..., A, D) with atom_mask   (..., A)
    ligand_feat: (..., M, D) with ligand_mask (..., M)
    params: dict with 'g0','b0' (layernorm) and 'g1','b1' (layernorm1), each (D,)
    """
    D = res_H.shape[-1]

    res_out = _masked_layernorm_2d(
        res_H.reshape(-1, D), atom_mask.reshape(-1),
        params["g0"], params["b0"]).reshape(res_H.shape)

    lig_out = _masked_layernorm_2d(
        ligand_feat.reshape(-1, D), ligand_mask.reshape(-1),
        params["g1"], params["b1"]).reshape(ligand_feat.shape)

    return res_out, lig_out


def _reference(res_H, ligand_feat, atom_mask, ligand_mask, params):
    """Pure-JAX reference for correctness checking."""
    def ln(x, g, b):
        mu = jnp.mean(x, axis=-1, keepdims=True)
        var = jnp.mean((x - mu) ** 2, axis=-1, keepdims=True)
        return (x - mu) * lax.rsqrt(var + EPS) * g + b

    r = jnp.where(atom_mask[..., None].astype(bool),
                  ln(res_H, params["g0"], params["b0"]), res_H)
    l = jnp.where(ligand_mask[..., None].astype(bool),
                  ln(ligand_feat, params["g1"], params["b1"]), ligand_feat)
    return r, l


if __name__ == "__main__":
    key = jax.random.PRNGKey(0)
    k1, k2, k3, k4 = jax.random.split(key, 4)

    B, N, A, M, D = 2, 8, 4, 8, 32  # d_hidden = 32

    res_H = jax.random.normal(k1, (B, N, A, D), dtype=jnp.float32)
    ligand_feat = jax.random.normal(k2, (B, M, D), dtype=jnp.float32)
    atom_mask = (jax.random.uniform(k3, (B, N, A)) > 0.5)
    ligand_mask = (jax.random.uniform(k4, (B, M)) > 0.5)

    # Deterministic parameter init (matches nn.LayerNorm defaults: weight=1, bias=0).
    params = {
        "g0": jnp.ones((D,), jnp.float32),
        "b0": jnp.zeros((D,), jnp.float32),
        "g1": jnp.ones((D,), jnp.float32),
        "b1": jnp.zeros((D,), jnp.float32),
    }

    res_out, lig_out = jax.jit(
        functools.partial(invariant_layer_norm, params=params)
    )(res_H, ligand_feat, atom_mask, ligand_mask)
    jax.block_until_ready((res_out, lig_out))

    ref_res, ref_lig = _reference(res_H, ligand_feat, atom_mask, ligand_mask, params)
    assert jnp.allclose(res_out, ref_res, atol=1e-5, rtol=1e-5)
    assert jnp.allclose(lig_out, ref_lig, atol=1e-5, rtol=1e-5)

    print("KERNEL_OK")
</pallas_src>

<mosaic_0001>
module attributes {stable_mosaic.version = 11 : i64} {
  func.func @_iln_kernel(%arg0: i32, %arg1: memref<8x32xf32, #tpu.memory_space<vmem>>, %arg2: memref<8x1xi32, #tpu.memory_space<vmem>>, %arg3: memref<1x32xf32, #tpu.memory_space<vmem>>, %arg4: memref<1x32xf32, #tpu.memory_space<vmem>>, %arg5: memref<8x32xf32, #tpu.memory_space<vmem>>) attributes {dimension_semantics = [#tpu.dimension_semantics<parallel>], iteration_bounds = array<i64: 8>, scalar_prefetch = 0 : i64, scratch_operands = 0 : i64, tpu.core_type = #tpu.core_type<tc>, window_params = [{transform_indices = @transform_0, window_bounds = array<i64: 8, 32>}, {transform_indices = @transform_1, window_bounds = array<i64: 8, 1>}, {pipeline_mode = #tpu.pipeline_mode<synchronous>, transform_indices = @transform_2, window_bounds = array<i64: 1, 32>}, {pipeline_mode = #tpu.pipeline_mode<synchronous>, transform_indices = @transform_3, window_bounds = array<i64: 1, 32>}, {transform_indices = @transform_4, window_bounds = array<i64: 8, 32>}]} {
    %c0 = arith.constant 0 : index
    %c0_0 = arith.constant 0 : index
    %0 = vector.load %arg1[%c0, %c0_0] : memref<8x32xf32, #tpu.memory_space<vmem>>, vector<8x32xf32>
    %cst = arith.constant dense<0.000000e+00> : vector<8xf32>
    %1 = vector.multi_reduction <add>, %0, %cst [1] : vector<8x32xf32> to vector<8xf32>
    %2 = vector.shape_cast %1 : vector<8xf32> to vector<8x1xf32>
    %cst_1 = arith.constant 3.200000e+01 : f32
    %3 = vector.broadcast %cst_1 : f32 to vector<8x1xf32>
    %4 = arith.divf %2, %3 : vector<8x1xf32>
    %5 = vector.broadcast %4 : vector<8x1xf32> to vector<8x32xf32>
    %6 = arith.subf %0, %5 : vector<8x32xf32>
    %7 = arith.mulf %6, %6 : vector<8x32xf32>
    %cst_2 = arith.constant dense<0.000000e+00> : vector<8xf32>
    %8 = vector.multi_reduction <add>, %7, %cst_2 [1] : vector<8x32xf32> to vector<8xf32>
    %9 = vector.shape_cast %8 : vector<8xf32> to vector<8x1xf32>
    %cst_3 = arith.constant 3.200000e+01 : f32
    %10 = vector.broadcast %cst_3 : f32 to vector<8x1xf32>
    %11 = arith.divf %9, %10 : vector<8x1xf32>
    %cst_4 = arith.constant 9.99999974E-6 : f32
    %12 = vector.broadcast %cst_4 : f32 to vector<8x1xf32>
    %13 = arith.addf %11, %12 : vector<8x1xf32>
    %14 = math.rsqrt %13 : vector<8x1xf32>
    %15 = vector.broadcast %14 : vector<8x1xf32> to vector<8x32xf32>
    %16 = arith.mulf %6, %15 : vector<8x32xf32>
    %c0_5 = arith.constant 0 : index
    %c0_6 = arith.constant 0 : index
    %17 = vector.load %arg3[%c0_5, %c0_6] : memref<1x32xf32, #tpu.memory_space<vmem>>, vector<1x32xf32>
    %18 = vector.broadcast %17 : vector<1x32xf32> to vector<8x32xf32>
    %19 = arith.mulf %16, %18 : vector<8x32xf32>
    %c0_7 = arith.constant 0 : index
    %c0_8 = arith.constant 0 : index
    %20 = vector.load %arg4[%c0_7, %c0_8] : memref<1x32xf32, #tpu.memory_space<vmem>>, vector<1x32xf32>
    %21 = vector.broadcast %20 : vector<1x32xf32> to vector<8x32xf32>
    %22 = arith.addf %19, %21 : vector<8x32xf32>
    %c0_9 = arith.constant 0 : index
    %c0_10 = arith.constant 0 : index
    %23 = vector.load %arg2[%c0_9, %c0_10] : memref<8x1xi32, #tpu.memory_space<vmem>>, vector<8x1xi32>
    %c0_i32 = arith.constant 0 : i32
    %24 = vector.broadcast %c0_i32 : i32 to vector<8x1xi32>
    %25 = arith.cmpi ne, %23, %24 : vector<8x1xi32>
    %c0_11 = arith.constant 0 : index
    %c0_12 = arith.constant 0 : index
    %26 = vector.load %arg1[%c0_11, %c0_12] : memref<8x32xf32, #tpu.memory_space<vmem>>, vector<8x32xf32>
    %27 = vector.shape_cast %25 : vector<8x1xi1> to vector<8x1xi1>
    %28 = vector.broadcast %27 : vector<8x1xi1> to vector<8x32xi1>
    %29 = arith.select %28, %22, %26 : vector<8x32xi1>, vector<8x32xf32>
    %c0_13 = arith.constant 0 : index
    %c0_14 = arith.constant 0 : index
    %30 = vector.load %arg5[%c0_13, %c0_14] : memref<8x32xf32, #tpu.memory_space<vmem>>, vector<8x32xf32>
    tpu.vector_store %arg5[%c0_13, %c0_14], %29 {strides = array<i32>} : memref<8x32xf32, #tpu.memory_space<vmem>>, vector<8x32xf32>,
    return
  }
  func.func @transform_0(%arg0: i32) -> (i32, i32) {
    %c0_i32 = arith.constant 0 : i32
    %c0_i32_0 = arith.constant 0 : i32
    return %arg0, %c0_i32 : i32, i32
  }
  func.func @transform_1(%arg0: i32) -> (i32, i32) {
    %c0_i32 = arith.constant 0 : i32
    %c0_i32_0 = arith.constant 0 : i32
    return %arg0, %c0_i32 : i32, i32
  }
  func.func @transform_2(%arg0: i32) -> (i32, i32) {
    %c0_i32 = arith.constant 0 : i32
    %c0_i32_0 = arith.constant 0 : i32
    %c0_i32_1 = arith.constant 0 : i32
    return %c0_i32, %c0_i32_0 : i32, i32
  }
  func.func @transform_3(%arg0: i32) -> (i32, i32) {
    %c0_i32 = arith.constant 0 : i32
    %c0_i32_0 = arith.constant 0 : i32
    %c0_i32_1 = arith.constant 0 : i32
    return %c0_i32, %c0_i32_0 : i32, i32
  }
  func.func @transform_4(%arg0: i32) -> (i32, i32) {
    %c0_i32 = arith.constant 0 : i32
    %c0_i32_0 = arith.constant 0 : i32
    return %arg0, %c0_i32 : i32, i32
  }
}

module attributes {stable_mosaic.version = 11 : i64} {
  func.func @_iln_kernel(%arg0: i32, %arg1: memref<8x32xf32, #tpu.memory_space<vmem>>, %arg2: memref<8x1xi32, #tpu.memory_space<vmem>>, %arg3: memref<1x32xf32, #tpu.memory_space<vmem>>, %arg4: memref<1x32xf32, #tpu.memory_space<vmem>>, %arg5: memref<8x32xf32, #tpu.memory_space<vmem>>) attributes {dimension_semantics = [#tpu.dimension_semantics<parallel>], iteration_bounds = array<i64: 2>, scalar_prefetch = 0 : i64, scratch_operands = 0 : i64, tpu.core_type = #tpu.core_type<tc>, window_params = [{transform_indices = @transform_0, window_bounds = array<i64: 8, 32>}, {transform_indices = @transform_1, window_bounds = array<i64: 8, 1>}, {pipeline_mode = #tpu.pipeline_mode<synchronous>, transform_indices = @transform_2, window_bounds = array<i64: 1, 32>}, {pipeline_mode = #tpu.pipeline_mode<synchronous>, transform_indices = @transform_3, window_bounds = array<i64: 1, 32>}, {transform_indices = @transform_4, window_bounds = array<i64: 8, 32>}]} {
    %c0 = arith.constant 0 : index
    %c0_0 = arith.constant 0 : index
    %0 = vector.load %arg1[%c0, %c0_0] : memref<8x32xf32, #tpu.memory_space<vmem>>, vector<8x32xf32>
    %cst = arith.constant dense<0.000000e+00> : vector<8xf32>
    %1 = vector.multi_reduction <add>, %0, %cst [1] : vector<8x32xf32> to vector<8xf32>
    %2 = vector.shape_cast %1 : vector<8xf32> to vector<8x1xf32>
    %cst_1 = arith.constant 3.200000e+01 : f32
    %3 = vector.broadcast %cst_1 : f32 to vector<8x1xf32>
    %4 = arith.divf %2, %3 : vector<8x1xf32>
    %5 = vector.broadcast %4 : vector<8x1xf32> to vector<8x32xf32>
    %6 = arith.subf %0, %5 : vector<8x32xf32>
    %7 = arith.mulf %6, %6 : vector<8x32xf32>
    %cst_2 = arith.constant dense<0.000000e+00> : vector<8xf32>
    %8 = vector.multi_reduction <add>, %7, %cst_2 [1] : vector<8x32xf32> to vector<8xf32>
    %9 = vector.shape_cast %8 : vector<8xf32> to vector<8x1xf32>
    %cst_3 = arith.constant 3.200000e+01 : f32
    %10 = vector.broadcast %cst_3 : f32 to vector<8x1xf32>
    %11 = arith.divf %9, %10 : vector<8x1xf32>
    %cst_4 = arith.constant 9.99999974E-6 : f32
    %12 = vector.broadcast %cst_4 : f32 to vector<8x1xf32>
    %13 = arith.addf %11, %12 : vector<8x1xf32>
    %14 = math.rsqrt %13 : vector<8x1xf32>
    %15 = vector.broadcast %14 : vector<8x1xf32> to vector<8x32xf32>
    %16 = arith.mulf %6, %15 : vector<8x32xf32>
    %c0_5 = arith.constant 0 : index
    %c0_6 = arith.constant 0 : index
    %17 = vector.load %arg3[%c0_5, %c0_6] : memref<1x32xf32, #tpu.memory_space<vmem>>, vector<1x32xf32>
    %18 = vector.broadcast %17 : vector<1x32xf32> to vector<8x32xf32>
    %19 = arith.mulf %16, %18 : vector<8x32xf32>
    %c0_7 = arith.constant 0 : index
    %c0_8 = arith.constant 0 : index
    %20 = vector.load %arg4[%c0_7, %c0_8] : memref<1x32xf32, #tpu.memory_space<vmem>>, vector<1x32xf32>
    %21 = vector.broadcast %20 : vector<1x32xf32> to vector<8x32xf32>
    %22 = arith.addf %19, %21 : vector<8x32xf32>
    %c0_9 = arith.constant 0 : index
    %c0_10 = arith.constant 0 : index
    %23 = vector.load %arg2[%c0_9, %c0_10] : memref<8x1xi32, #tpu.memory_space<vmem>>, vector<8x1xi32>
    %c0_i32 = arith.constant 0 : i32
    %24 = vector.broadcast %c0_i32 : i32 to vector<8x1xi32>
    %25 = arith.cmpi ne, %23, %24 : vector<8x1xi32>
    %c0_11 = arith.constant 0 : index
    %c0_12 = arith.constant 0 : index
    %26 = vector.load %arg1[%c0_11, %c0_12] : memref<8x32xf32, #tpu.memory_space<vmem>>, vector<8x32xf32>
    %27 = vector.shape_cast %25 : vector<8x1xi1> to vector<8x1xi1>
    %28 = vector.broadcast %27 : vector<8x1xi1> to vector<8x32xi1>
    %29 = arith.select %28, %22, %26 : vector<8x32xi1>, vector<8x32xf32>
    %c0_13 = arith.constant 0 : index
    %c0_14 = arith.constant 0 : index
    %30 = vector.load %arg5[%c0_13, %c0_14] : memref<8x32xf32, #tpu.memory_space<vmem>>, vector<8x32xf32>
    tpu.vector_store %arg5[%c0_13, %c0_14], %29 {strides = array<i32>} : memref<8x32xf32, #tpu.memory_space<vmem>>, vector<8x32xf32>,
    return
  }
  func.func @transform_0(%arg0: i32) -> (i32, i32) {
    %c0_i32 = arith.constant 0 : i32
    %c0_i32_0 = arith.constant 0 : i32
    return %arg0, %c0_i32 : i32, i32
  }
  func.func @transform_1(%arg0: i32) -> (i32, i32) {
    %c0_i32 = arith.constant 0 : i32
    %c0_i32_0 = arith.constant 0 : i32
    return %arg0, %c0_i32 : i32, i32
  }
  func.func @transform_2(%arg0: i32) -> (i32, i32) {
    %c0_i32 = arith.constant 0 : i32
    %c0_i32_0 = arith.constant 0 : i32
    %c0_i32_1 = arith.constant 0 : i32
    return %c0_i32, %c0_i32_0 : i32, i32
  }
  func.func @transform_3(%arg0: i32) -> (i32, i32) {
    %c0_i32 = arith.constant 0 : i32
    %c0_i32_0 = arith.constant 0 : i32
    %c0_i32_1 = arith.constant 0 : i32
    return %c0_i32, %c0_i32_0 : i32, i32
  }
  func.func @transform_4(%arg0: i32) -> (i32, i32) {
    %c0_i32 = arith.constant 0 : i32
    %c0_i32_0 = arith.constant 0 : i32
    return %arg0, %c0_i32 : i32, i32
  }
}

</mosaic_0001>

<bundles_post_ra>
// kernel: invariant_layer_norm.3
= control target key start
LH: loop header
LB: loop body
LE: loop exit
PB: predicated region body
PF: predicated region fallthrough
CT: control target
= control target key end

     0   :  { %9 = vsyncpa [#allocation3], 0  ;;  %s587_s0 = inlined_call_operand.vmem [shape: f32[16,32], index: 0, kind: input, shape index: {}]   ;;  %s588_s1 = inlined_call_operand.vmem [shape: s32[16,1], index: 1, kind: input, shape index: {}]   ;;  %s589_s2 = inlined_call_operand.vmem [shape: f32[1,32], index: 2, kind: input, shape index: {}]   ;;  %s590_s3 = inlined_call_operand.vmem [shape: f32[1,32], index: 3, kind: input, shape index: {}]   ;;  %s591_s4 = inlined_call_operand.hbm [shape: f32[16,32], index: 4, kind: output, shape index: {}]  }
   0x1   :  { %11 = vsyncpa [#allocation3 + $0x1], 0  ;;  %s482_s15 = smov 0   ;;  %s484_s16 = smov 0  }
   0x2   :  { %s486_s17 = smov 0   ;;  %s488_s18 = smov 0  }
   0x3 LB: > { %s503_s19 = sadd.s32 4294967295, %s453_s18   ;;  %s336_s20 = sadd.s32 4294967294, %s453_s18   ;;  %s453_s18 = sphi %s488_s18, %s597_s18   ;;  %s449_s17 = sphi %s486_s17, %s596_s17   ;;  %s445_s16 = sphi %s484_s16, %s595_s16   ;;  %s441_s15 = sphi %s482_s15, %s594_s15  }
   0x4   : > { %s507_s21 = sadd.s32 1, %s453_s18   ;;  %s118_s22 = sadd.s32 1, %s449_s17 }
   0x5   : > { %s115_s23 = ssub.s32 %s453_s18, %s507_s21  ;;  %p128_p0 = scmp.ne.s32.totalorder %s449_s17, %s445_s16 }
   0x6   : > { %p116_p1 = scmp.eq.s32.totalorder %s115_s23, 0  ;;  %p129_p2 = scmp.eq.s32.totalorder %s503_s19, 1 }
   0x7   : > { %p134_p3 = scmp.ne.s32.totalorder %s445_s16, %s441_s15  ;;  %p135_p4 = scmp.eq.s32.totalorder %s336_s20, 1 }
   0x8   : > { %s518_s24 = scalar_select %p116_p1, %s449_s17, %s118_s22  }
   0x9   : > { %p520_p5 = por %p129_p2, %p128_p0  ;;  %p524_p6 = por %p135_p4, %p134_p3 }
   0xa   : > { %p339_p7 = scmp.ge.s32.totalorder %s453_s18, 1  ;;  %p173_p8 = scmp.lt.s32.totalorder %s453_s18, 3 }
   0xc   : > { %p174_p9 = pnand %p339_p7, %p173_p8 }
   0xd   : > { %p202_p10 = scmp.lt.s32.totalorder (!%p174_p9), %s503_s19, 1  ;;  %s199_s9 = sand.u32 (!%p174_p9), 1, %s445_s16  }
   0xe   : > { %177 = sbr.rel (%p174_p9) target bundleno = 346 (0x15a), region = 36  ;;  %s340_s10 = sshll.u32 (!%p174_p9), %s199_s9, 3 }
   0xf   : > { %s346_s20 = sshll.u32 (!%p174_p9), %s503_s19, 7  ;;  %s201_s22 = scalar_lea.vmem (!%p174_p9), [#allocation2], %s340_s10 }
  0x10   : > { %s265_s23 = sshll.u32 (!%p174_p9), %s201_s22, 4  ;;  %s551_s29 = scalar_lea.hbm (!%p174_p9), %s591_s4, %s346_s20  ;;  %s266_s23 = int_to_ptr.vmem [resolvable:$true] %s265_s23 }
  0x11   : > { %s252_s30 = scalar_lea.sflag (!%p174_p9), [#allocation3], %s199_s9 }
  0x13   : > { %s203_s27 = scalar_select %p202_p10, %s503_s19, 1  ;;  %vm211_vm0 = vcmask 261120   ;;  %v455_v2 = vmov 0   ;;  %v343_v14 = vld [vmem:[%s589_s2] ss:$0 sm:$0xff] }
  0x14   : > { %389 = vset.pattern.permute.xlu1 %v455_v2  ;;  %390 = vset.pattern.permute.xlu0 %v455_v2  ;;  %v344_v17 = vld [vmem:[%s590_s3] ss:$0 sm:$0xff]  ;;  %s456_s19 = smov [#allocation2]  }
  0x15   : > { %s341_s28 = sshll.u32 %s203_s27, 3  ;;  %s397_s6 = sshll.u32 %s456_s19, 4  ;;  %s398_s6 = int_to_ptr.vmem [resolvable:$false] %s397_s6 }
  0x16   : > { %s205_s5 = scalar_lea.vmem %s587_s0, %s341_s28  ;;  %s209_s8 = scalar_lea.vmem %s588_s1, %s341_s28 }
  0x17   : > { %v210_v0 = vld [vmem:[%s205_s5] sm:$0xff]  ;;  %s393_s5 = scalar_lea.vmem %s266_s23, 128  ;;  %s399_s7 = scalar_lea.vmem %s398_s6, 256 }
  0x18   : > { %v212_v1 = vsel %vm211_vm0, %v210_v0, 0.0  ;;  %v242_v3 = vld [vmem:[%s209_s8] sm:$0xff]  ;;  %p394_p11 = scmp.ne.s32.totalorder %s266_s23, %s393_s5  ;;  %p400_p0 = scmp.lt.s32.totalorder %s266_s23, %s398_s6 }
  0x19   : > { %213 = vadd.xlane.f32.xlu0 %v212_v1  ;;  %vm243_vm1 = vcmp.ne.s32.totalorder %v242_v3, 0  ;;  %p401_p1 = scmp.lt.s32.totalorder %s399_s7, %s393_s5 }
  0x1a   : > { %v244_v4 = vsel %vm243_vm1, 1, %v455_v2  ;;  %p395_p12 = pnand %p394_p11, %p520_p5 }
  0x1b   : > { %246 = vperm.xlu1 %389, %v244_v4   ;;  %p402_p2 = por %p401_p1, %p400_p0 }
  0x1c   : > { %p396_p13 = pneg %p395_p12 }
  0x1e   : > { %p403_p3 = pnand %p402_p2, %p396_p13 }
  0x96   : > { %v247_v15 = vpop.permute.xlu1 %246 }
  0x97   : > { %vm248_vm2 = vcmp.eq.s32.totalorder %v247_v15, 1 }
  0xa2   : > { %v214_v5 = vpop.xlane.xlu0 %213 }
  0xa3   : > { %v216_v6 = vmul.f32 0.03125, %v214_v5 }
  0xa5   : > { %v217_v7 = vsub.f32 %v210_v0, %v216_v6 }
  0xa7   : > { %v218_v8 = vmul.f32 %v217_v7, %v217_v7 }
  0xa9   : > { %v219_v9 = vsel %vm211_vm0, %v218_v8, 0.0 }
  0xaa   : > { %220 = vadd.xlane.f32.xlu0 %v219_v9 }
 0x133   : > { %v221_v10 = vpop.xlane.xlu0 %220 }
 0x134   : > { %v222_v11 = vmul.f32 0.03125, %v221_v10 }
 0x136   : > { %v223_v12 = vadd.f32 1e-05, %v222_v11 }
 0x138   : > { %391 = vrsqrt.f32 %v223_v12 }
 0x145   : > { %v392_v13 = vpop.eup %391 }
 0x146   : > { %v225_v16 = vmul.f32 %v392_v13, %v217_v7 }
 0x148   : > { %v233_v18 = vmul.f32 %v343_v14, %v225_v16 }
 0x14a   : > { %v241_v19 = vadd.f32 %v344_v17, %v233_v18 }
 0x14c   : > { %v249_v20 = vsel %vm248_vm2, %v241_v19, %v210_v0 }
 0x14d   : > { %250 = vst.msk [vmem:[%s201_s22] sm:$0xff] %vm211_vm0, %v249_v20 }
 0x14e   : > { %406 = shalt.err (!%p403_p3)
}
 0x14f   : > { %s407_s8 = scalar_lea.hbm %s551_s29, 128  ;;  %s411_s11 = scalar_lea.hbm %s591_s4, 256 }
 0x150   : > { %p408_p4 = scmp.ne.s32.totalorder %s551_s29, %s407_s8  ;;  %p412_p9 = scmp.lt.s32.totalorder %s551_s29, %s591_s4 }
 0x151   : > { %p413_p10 = scmp.lt.s32.totalorder %s411_s11, %s407_s8 }
 0x152   : > { %p409_p7 = pnand %p408_p4, %p520_p5 }
 0x153   : > { %p414_p11 = por %p413_p10, %p412_p9 }
 0x154   : > { %p410_p8 = pneg %p409_p7 }
 0x156   : > { %p415_p12 = pnand %p414_p11, %p410_p8 }
 0x158   : > { %418 = shalt.err (!%p415_p12)
}
 0x159   : > { %349 = dma.vmem_to_hbm [thread:$0]  (%p520_p5), %s266_s23, 128, %s551_s29, %s252_s30  }
 0x15a PF: > { %p355_p13 = scmp.ge.s32.totalorder %s453_s18, 2  ;;  %s277_s14 = sand.u32 1, %s441_s15  }
 0x15b   : > { %s278_s20 = scalar_lea.sflag [#allocation3], %s277_s14 }
 0x15c   : > { %p352_p0 = pnand %p355_p13, %p524_p6 }
 0x15e   : > { %p353_p1 = pneg %p352_p0 }
 0x160   : > { %436 = dma.done.wait (%p353_p1), %s278_s20, 128  }
 0x161   : > { %438 = vsyncadd (%p353_p1), %s278_s20, 4294967168  ;;  %p14_p2 = scmp.ge.s32.totalorder %s507_s21, 4   ;;  %s594_s15 = smov %s445_s16 }
 0x162   : > { %s595_s16 = smov %s449_s17  ;;  %s596_s17 = smov %s518_s24 }
 0x163   : > { %s597_s18 = smov %s507_s21  ;;  %16 = sbr.rel (!%p14_p2) target bundleno = 3 (0x3), region = 74 }
 0x168   :  { %283 = vsyncpa [#allocation3], 1 }
 0x169   :  { %285 = vsyncpa [#allocation3 + $0x1], 1 }

// kernel: invariant_layer_norm.2
= control target key start
LH: loop header
LB: loop body
LE: loop exit
PB: predicated region body
PF: predicated region fallthrough
CT: control target
= control target key end

     0   :  { %9 = vsyncpa [#allocation3], 0  ;;  %s587_s0 = inlined_call_operand.vmem [shape: f32[64,32], index: 0, kind: input, shape index: {}]   ;;  %s588_s1 = inlined_call_operand.vmem [shape: s32[64,1], index: 1, kind: input, shape index: {}]   ;;  %s589_s2 = inlined_call_operand.vmem [shape: f32[1,32], index: 2, kind: input, shape index: {}]   ;;  %s590_s3 = inlined_call_operand.vmem [shape: f32[1,32], index: 3, kind: input, shape index: {}]   ;;  %s591_s4 = inlined_call_operand.hbm [shape: f32[64,32], index: 4, kind: output, shape index: {}]  }
   0x1   :  { %11 = vsyncpa [#allocation3 + $0x1], 0  ;;  %s482_s15 = smov 0   ;;  %s484_s16 = smov 0  }
   0x2   :  { %s486_s17 = smov 0   ;;  %s488_s18 = smov 0  }
   0x3 LB: > { %s503_s19 = sadd.s32 4294967295, %s453_s18   ;;  %s336_s20 = sadd.s32 4294967294, %s453_s18   ;;  %s453_s18 = sphi %s488_s18, %s597_s18   ;;  %s449_s17 = sphi %s486_s17, %s596_s17   ;;  %s445_s16 = sphi %s484_s16, %s595_s16   ;;  %s441_s15 = sphi %s482_s15, %s594_s15  }
   0x4   : > { %s507_s21 = sadd.s32 1, %s453_s18   ;;  %s118_s22 = sadd.s32 1, %s449_s17 }
   0x5   : > { %s115_s23 = ssub.s32 %s453_s18, %s507_s21  ;;  %p128_p0 = scmp.ne.s32.totalorder %s449_s17, %s445_s16 }
   0x6   : > { %p116_p1 = scmp.eq.s32.totalorder %s115_s23, 0  ;;  %p129_p2 = scmp.eq.s32.totalorder %s503_s19, 7 }
   0x7   : > { %p134_p3 = scmp.ne.s32.totalorder %s445_s16, %s441_s15  ;;  %p135_p4 = scmp.eq.s32.totalorder %s336_s20, 7 }
   0x8   : > { %s518_s24 = scalar_select %p116_p1, %s449_s17, %s118_s22  }
   0x9   : > { %p520_p5 = por %p129_p2, %p128_p0  ;;  %p524_p6 = por %p135_p4, %p134_p3 }
   0xa   : > { %p339_p7 = scmp.ge.s32.totalorder %s453_s18, 1  ;;  %p173_p8 = scmp.lt.s32.totalorder %s453_s18, 9 }
   0xc   : > { %p174_p9 = pnand %p339_p7, %p173_p8 }
   0xd   : > { %p202_p10 = scmp.lt.s32.totalorder (!%p174_p9), %s503_s19, 7  ;;  %s199_s9 = sand.u32 (!%p174_p9), 1, %s445_s16  }
   0xe   : > { %177 = sbr.rel (%p174_p9) target bundleno = 346 (0x15a), region = 36  ;;  %s340_s10 = sshll.u32 (!%p174_p9), %s199_s9, 3 }
   0xf   : > { %s346_s20 = sshll.u32 (!%p174_p9), %s503_s19, 7  ;;  %s201_s22 = scalar_lea.vmem (!%p174_p9), [#allocation2], %s340_s10 }
  0x10   : > { %s265_s23 = sshll.u32 (!%p174_p9), %s201_s22, 4  ;;  %s551_s29 = scalar_lea.hbm (!%p174_p9), %s591_s4, %s346_s20  ;;  %s266_s23 = int_to_ptr.vmem [resolvable:$true] %s265_s23 }
  0x11   : > { %s252_s30 = scalar_lea.sflag (!%p174_p9), [#allocation3], %s199_s9 }
  0x13   : > { %s203_s27 = scalar_select %p202_p10, %s503_s19, 7  ;;  %vm211_vm0 = vcmask 261120   ;;  %v455_v2 = vmov 0   ;;  %v343_v14 = vld [vmem:[%s589_s2] ss:$0 sm:$0xff] }
  0x14   : > { %389 = vset.pattern.permute.xlu1 %v455_v2  ;;  %390 = vset.pattern.permute.xlu0 %v455_v2  ;;  %v344_v17 = vld [vmem:[%s590_s3] ss:$0 sm:$0xff]  ;;  %s456_s19 = smov [#allocation2]  }
  0x15   : > { %s341_s28 = sshll.u32 %s203_s27, 3  ;;  %s397_s6 = sshll.u32 %s456_s19, 4  ;;  %s398_s6 = int_to_ptr.vmem [resolvable:$false] %s397_s6 }
  0x16   : > { %s205_s5 = scalar_lea.vmem %s587_s0, %s341_s28  ;;  %s209_s8 = scalar_lea.vmem %s588_s1, %s341_s28 }
  0x17   : > { %v210_v0 = vld [vmem:[%s205_s5] sm:$0xff]  ;;  %s393_s5 = scalar_lea.vmem %s266_s23, 128  ;;  %s399_s7 = scalar_lea.vmem %s398_s6, 256 }
  0x18   : > { %v212_v1 = vsel %vm211_vm0, %v210_v0, 0.0  ;;  %v242_v3 = vld [vmem:[%s209_s8] sm:$0xff]  ;;  %p394_p11 = scmp.ne.s32.totalorder %s266_s23, %s393_s5  ;;  %p400_p0 = scmp.lt.s32.totalorder %s266_s23, %s398_s6 }
  0x19   : > { %213 = vadd.xlane.f32.xlu0 %v212_v1  ;;  %vm243_vm1 = vcmp.ne.s32.totalorder %v242_v3, 0  ;;  %p401_p1 = scmp.lt.s32.totalorder %s399_s7, %s393_s5 }
  0x1a   : > { %v244_v4 = vsel %vm243_vm1, 1, %v455_v2  ;;  %p395_p12 = pnand %p394_p11, %p520_p5 }
  0x1b   : > { %246 = vperm.xlu1 %389, %v244_v4   ;;  %p402_p2 = por %p401_p1, %p400_p0 }
  0x1c   : > { %p396_p13 = pneg %p395_p12 }
  0x1e   : > { %p403_p3 = pnand %p402_p2, %p396_p13 }
  0x96   : > { %v247_v15 = vpop.permute.xlu1 %246 }
  0x97   : > { %vm248_vm2 = vcmp.eq.s32.totalorder %v247_v15, 1 }
  0xa2   : > { %v214_v5 = vpop.xlane.xlu0 %213 }
  0xa3   : > { %v216_v6 = vmul.f32 0.03125, %v214_v5 }
  0xa5   : > { %v217_v7 = vsub.f32 %v210_v0, %v216_v6 }
  0xa7   : > { %v218_v8 = vmul.f32 %v217_v7, %v217_v7 }
  0xa9   : > { %v219_v9 = vsel %vm211_vm0, %v218_v8, 0.0 }
  0xaa   : > { %220 = vadd.xlane.f32.xlu0 %v219_v9 }
 0x133   : > { %v221_v10 = vpop.xlane.xlu0 %220 }
 0x134   : > { %v222_v11 = vmul.f32 0.03125, %v221_v10 }
 0x136   : > { %v223_v12 = vadd.f32 1e-05, %v222_v11 }
 0x138   : > { %391 = vrsqrt.f32 %v223_v12 }
 0x145   : > { %v392_v13 = vpop.eup %391 }
 0x146   : > { %v225_v16 = vmul.f32 %v392_v13, %v217_v7 }
 0x148   : > { %v233_v18 = vmul.f32 %v343_v14, %v225_v16 }
 0x14a   : > { %v241_v19 = vadd.f32 %v344_v17, %v233_v18 }
 0x14c   : > { %v249_v20 = vsel %vm248_vm2, %v241_v19, %v210_v0 }
 0x14d   : > { %250 = vst.msk [vmem:[%s201_s22] sm:$0xff] %vm211_vm0, %v249_v20 }
 0x14e   : > { %406 = shalt.err (!%p403_p3)
}
 0x14f   : > { %s407_s8 = scalar_lea.hbm %s551_s29, 128  ;;  %s411_s11 = scalar_lea.hbm %s591_s4, 1024 }
 0x150   : > { %p408_p4 = scmp.ne.s32.totalorder %s551_s29, %s407_s8  ;;  %p412_p9 = scmp.lt.s32.totalorder %s551_s29, %s591_s4 }
 0x151   : > { %p413_p10 = scmp.lt.s32.totalorder %s411_s11, %s407_s8 }
 0x152   : > { %p409_p7 = pnand %p408_p4, %p520_p5 }
 0x153   : > { %p414_p11 = por %p413_p10, %p412_p9 }
 0x154   : > { %p410_p8 = pneg %p409_p7 }
 0x156   : > { %p415_p12 = pnand %p414_p11, %p410_p8 }
 0x158   : > { %418 = shalt.err (!%p415_p12)
}
 0x159   : > { %349 = dma.vmem_to_hbm [thread:$0]  (%p520_p5), %s266_s23, 128, %s551_s29, %s252_s30  }
 0x15a PF: > { %p355_p13 = scmp.ge.s32.totalorder %s453_s18, 2  ;;  %s277_s14 = sand.u32 1, %s441_s15  }
 0x15b   : > { %s278_s20 = scalar_lea.sflag [#allocation3], %s277_s14 }
 0x15c   : > { %p352_p0 = pnand %p355_p13, %p524_p6 }
 0x15e   : > { %p353_p1 = pneg %p352_p0 }
 0x160   : > { %436 = dma.done.wait (%p353_p1), %s278_s20, 128  }
 0x161   : > { %438 = vsyncadd (%p353_p1), %s278_s20, 4294967168  ;;  %p14_p2 = scmp.ge.s32.totalorder %s507_s21, 10   ;;  %s594_s15 = smov %s445_s16 }
 0x162   : > { %s595_s16 = smov %s449_s17  ;;  %s596_s17 = smov %s518_s24 }
 0x163   : > { %s597_s18 = smov %s507_s21  ;;  %16 = sbr.rel (!%p14_p2) target bundleno = 3 (0x3), region = 74 }
 0x168   :  { %283 = vsyncpa [#allocation3], 1 }
 0x169   :  { %285 = vsyncpa [#allocation3 + $0x1], 1 }

</bundles_post_ra>
